<compile_context>
chip_gen: v5e
topology: v5e:2x2
jax: 0.10.0
libtpu: 0.0.40
codegen_flags: <defaults>
</compile_context>

<pallas_src>
import functools
import math

import jax
import jax.numpy as jnp
from jax.experimental import pallas as pl
from jax.experimental.pallas import tpu as pltpu


_BLOCK_BUDGET_BYTES = 4 * 1024 * 1024  # per-block footprint target (input dtype)
_VMEM_LIMIT_BYTES = 32 * 1024 * 1024


def _round_up(x, m):
    return ((x + m - 1) // m) * m


def _normalize_kernel(scale_ref, x_ref, o_ref, *, eps, axis):
    # scale_ref: SMEM (1,) f32 parameter
    # x_ref/o_ref: VMEM tile; L2-normalize along `axis` (fully inside the block).
    x = x_ref[...].astype(jnp.float32)
    sq = jnp.sum(x * x, axis=axis, keepdims=True)
    # max(norm, eps) == sqrt(max(sq, eps^2))  (eps >= 0), so one rsqrt + one mul.
    inv = scale_ref[0] * jax.lax.rsqrt(jnp.maximum(sq, eps * eps))
    o_ref[...] = (x * inv).astype(o_ref.dtype)


def my_normalize(x, scale, *, dim, eps=0.0):
    """scale * F.normalize(x, p=2, dim=dim, eps=eps) — Pallas TPU hot path.

    Note: like torch with eps=0, all-zero rows produce NaN/Inf (torch's
    default is eps=1e-12; the module spec uses eps=0).
    """
    ndim = x.ndim
    dim = dim % ndim
    shape = x.shape
    D = shape[dim]
    pre = math.prod(shape[:dim]) if dim > 0 else 1
    suf = math.prod(shape[dim + 1:]) if dim < ndim - 1 else 1
    itemsize = jnp.dtype(x.dtype).itemsize
    scale_f32 = jnp.asarray(scale, dtype=jnp.float32).reshape((1,))

    cparams = pltpu.CompilerParams(
        dimension_semantics=None,  # set below per case
        vmem_limit_bytes=_VMEM_LIMIT_BYTES,
    )

    if suf > 1:
        # dim is NOT the last axis (e.g. NCHW channels): contiguous reshape to
        # (pre, D, suf); D sits on sublanes, the flattened trailing dims are
        # lane-dense.  Reduce over axis=1.
        x3 = x.reshape(pre, D, suf)
        slab_bytes = D * suf * itemsize
        if slab_bytes <= _BLOCK_BUDGET_BYTES:
            t_suf = suf                                   # full (no raggedness)
            tb = min(pre, max(1, _BLOCK_BUDGET_BYTES // slab_bytes))
        else:
            tb = 1
            t_suf = max(128, (_BLOCK_BUDGET_BYTES // (D * itemsize)) // 128 * 128)
            t_suf = min(t_suf, _round_up(suf, 128))
        grid = (pl.cdiv(pre, tb), pl.cdiv(suf, t_suf))
        out = pl.pallas_call(
            functools.partial(_normalize_kernel, eps=float(eps), axis=1),
            out_shape=jax.ShapeDtypeStruct((pre, D, suf), x.dtype),
            grid=grid,
            in_specs=[
                pl.BlockSpec(memory_space=pltpu.MemorySpace.SMEM),      # scale
                pl.BlockSpec((tb, D, t_suf), lambda i, j: (i, 0, j)),   # x tile
            ],
            out_specs=pl.BlockSpec((tb, D, t_suf), lambda i, j: (i, 0, j)),
            compiler_params=pltpu.CompilerParams(
                dimension_semantics=("parallel", "parallel"),
                vmem_limit_bytes=_VMEM_LIMIT_BYTES,
            ),
        )(scale_f32, x3)
        return out.reshape(shape)

    # dim IS the last axis: rows on sublanes, D lane-dense on lanes.
    # (For very small last-axis D this layout is lane-sparse, but it is the
    #  contiguous, transpose-free layout; large tm amortizes it.)
    M = pre
    x2 = x.reshape(M, D)
    tm = max(8, (_BLOCK_BUDGET_BYTES // max(1, D * itemsize)) // 8 * 8)
    tm = min(tm, _round_up(M, 8))
    grid = (pl.cdiv(M, tm),)
    out = pl.pallas_call(
        functools.partial(_normalize_kernel, eps=float(eps), axis=-1),
        out_shape=jax.ShapeDtypeStruct((M, D), x.dtype),
        grid=grid,
        in_specs=[
            pl.BlockSpec(memory_space=pltpu.MemorySpace.SMEM),   # scale
            pl.BlockSpec((tm, D), lambda i: (i, 0)),             # x tile
        ],
        out_specs=pl.BlockSpec((tm, D), lambda i: (i, 0)),
        compiler_params=pltpu.CompilerParams(
            dimension_semantics=("parallel",),
            vmem_limit_bytes=_VMEM_LIMIT_BYTES,
        ),
    )(scale_f32, x2)
    return out.reshape(shape)


if __name__ == "__main__":
    key = jax.random.PRNGKey(0)

    # Module config (matching MyNormalize.__init__): normalize over channels.
    dim = 1           # NCHW channels
    scale_init = 1.5
    eps = 0.0
    scale_param = jnp.ones((1,), dtype=jnp.float32) * scale_init

    # Example input: NCHW
    x = jax.random.normal(key, (2, 4, 16, 16), dtype=jnp.float32)

    y = my_normalize(x, scale_param, dim=dim, eps=eps)
    jax.block_until_ready(y)

    # sanity check vs pure-JAX reference
    norm = jnp.sqrt(jnp.sum(x * x, axis=dim, keepdims=True))
    ref = scale_param[0] * x / jnp.maximum(norm, eps)
    assert y.shape == x.shape and y.dtype == x.dtype
    assert jnp.allclose(y, ref, atol=1e-5, rtol=1e-5)

    # also exercise the "dim is last axis" path once
    x2 = jax.random.normal(jax.random.PRNGKey(1), (8, 32), dtype=jnp.float32)
    y2 = my_normalize(x2, scale_param, dim=-1, eps=eps)
    jax.block_until_ready(y2)
    norm2 = jnp.sqrt(jnp.sum(x2 * x2, axis=-1, keepdims=True))
    ref2 = scale_param[0] * x2 / jnp.maximum(norm2, eps)
    assert jnp.allclose(y2, ref2, atol=1e-5, rtol=1e-5)

    print("KERNEL_OK")
</pallas_src>

<mosaic_0001>
module attributes {stable_mosaic.version = 11 : i64} {
  func.func @_normalize_kernel(%arg0: i32, %arg1: i32, %arg2: memref<1xf32, #tpu.memory_space<smem>>, %arg3: memref<2x4x256xf32, #tpu.memory_space<vmem>>, %arg4: memref<2x4x256xf32, #tpu.memory_space<vmem>>) attributes {dimension_semantics = [#tpu.dimension_semantics<parallel>, #tpu.dimension_semantics<parallel>], iteration_bounds = array<i64: 1, 1>, scalar_prefetch = 0 : i64, scratch_operands = 0 : i64, tpu.core_type = #tpu.core_type<tc>, window_params = [{transform_indices = @transform_0, window_bounds = array<i64: 1>}, {transform_indices = @transform_1, window_bounds = array<i64: 2, 4, 256>}, {transform_indices = @transform_2, window_bounds = array<i64: 2, 4, 256>}]} {
    %c0 = arith.constant 0 : index
    %c0_0 = arith.constant 0 : index
    %c0_1 = arith.constant 0 : index
    %0 = vector.load %arg3[%c0, %c0_0, %c0_1] : memref<2x4x256xf32, #tpu.memory_space<vmem>>, vector<2x4x256xf32>
    %1 = arith.mulf %0, %0 : vector<2x4x256xf32>
    %cst = arith.constant dense<0.000000e+00> : vector<2x256xf32>
    %2 = vector.multi_reduction <add>, %1, %cst [1] : vector<2x4x256xf32> to vector<2x256xf32>
    %3 = vector.shape_cast %2 : vector<2x256xf32> to vector<2x1x256xf32>
    %c0_2 = arith.constant 0 : index
    %4 = memref.load %arg2[%c0_2] : memref<1xf32, #tpu.memory_space<smem>>
    %cst_3 = arith.constant 0.000000e+00 : f32
    %5 = vector.broadcast %cst_3 : f32 to vector<2x1x256xf32>
    %6 = arith.maximumf %3, %5 : vector<2x1x256xf32>
    %7 = math.rsqrt %6 : vector<2x1x256xf32>
    %8 = vector.broadcast %4 : f32 to vector<2x1x256xf32>
    %9 = arith.mulf %8, %7 : vector<2x1x256xf32>
    %10 = vector.broadcast %9 : vector<2x1x256xf32> to vector<2x4x256xf32>
    %11 = arith.mulf %0, %10 : vector<2x4x256xf32>
    %c0_4 = arith.constant 0 : index
    %c0_5 = arith.constant 0 : index
    %c0_6 = arith.constant 0 : index
    %12 = vector.load %arg4[%c0_4, %c0_5, %c0_6] : memref<2x4x256xf32, #tpu.memory_space<vmem>>, vector<2x4x256xf32>
    tpu.vector_store %arg4[%c0_4, %c0_5, %c0_6], %11 {strides = array<i32>} : memref<2x4x256xf32, #tpu.memory_space<vmem>>, vector<2x4x256xf32>,
    return
  }
  func.func @transform_0(%arg0: i32, %arg1: i32) -> i32 {
    %c0_i32 = arith.constant 0 : i32
    %c0_i32_0 = arith.constant 0 : i32
    return %c0_i32 : i32
  }
  func.func @transform_1(%arg0: i32, %arg1: i32) -> (i32, i32, i32) {
    %c0_i32 = arith.constant 0 : i32
    %c0_i32_0 = arith.constant 0 : i32
    return %arg0, %c0_i32, %arg1 : i32, i32, i32
  }
  func.func @transform_2(%arg0: i32, %arg1: i32) -> (i32, i32, i32) {
    %c0_i32 = arith.constant 0 : i32
    %c0_i32_0 = arith.constant 0 : i32
    return %arg0, %c0_i32, %arg1 : i32, i32, i32
  }
}

</mosaic_0001>

<bundles_post_ra>
// kernel: tpu_custom_call.1
= control target key start
LH: loop header
LB: loop body
LE: loop exit
PB: predicated region body
PF: predicated region fallthrough
CT: control target
= control target key end

     0   :  { %8 = vsyncpa [#allocation4], 0  ;;  %s278_s0 = inlined_call_operand.<no memory space> [shape: f32[1], index: 0, kind: input, shape index: {}]   ;;  %s279_s1 = inlined_call_operand.hbm [shape: f32[2,4,256], index: 1, kind: input, shape index: {}]   ;;  %s280_s2 = inlined_call_operand.hbm [shape: f32[2,4,256], index: 2, kind: output, shape index: {}]  }
   0x1   :  { %9 = vsyncpa [#allocation5], 0  ;;  %s16_s11 = sshll.u32 %s279_s1, 4  ;;  %s222_s12 = smov [#allocation3]   ;;  %s17_s11 = int_to_ptr.hbm [resolvable:$true] %s16_s11 }
   0x2   :  { %s18_s13 = sshll.u32 %s222_s12, 4  ;;  %s223_s14 = smov 128   ;;  %s19_s13 = int_to_ptr.vmem [resolvable:$true] %s18_s13 }
   0x3   :  { %s224_s15 = smov 8  }
   0x4   :  { %24 = dma.hbm_to_vmem [thread:$0]  %s17_s11, 256, %s19_s13, [#allocation4], %s223_s14, %s223_s14, %s224_s15  }
   0x5   :  { %218 = dma.done.wait [#allocation4], 256  }
   0x6   :  { %219 = vsyncadd [#allocation4], 4294967040  ;;  %v247_v0 = vld [vmem:[#allocation3] sm:$0xff]  ;;  %v249_v1 = vld [vmem:[#allocation3 + $0x8] sm:$0xff]  ;;  %vm46_vm0 = vcmask 1043456   ;;  %v120_v57 = vstv %s278_s0  ;;  %s225_s0 = smov [#allocation6]  }
   0x7   :  { %v31_v2 = vmul.f32 %v247_v0, %v247_v0  ;;  %v32_v3 = vmul.f32 %v249_v1, %v249_v1  ;;  %s143_s17 = sshll.u32 %s225_s0, 4  ;;  %s145_s20 = sshll.u32 %s280_s2, 4  ;;  %s144_s17 = int_to_ptr.vmem [resolvable:$true] %s143_s17  ;;  %s146_s20 = int_to_ptr.hbm [resolvable:$true] %s145_s20 }
   0x9   :  { %35 = vst [vmem:[#allocation1] ss:$2 sm:$0xff] %v31_v2 }
   0xa   :  { %39 = vst [vmem:[#allocation1 + $0x10] ss:$2 sm:$0xff] %v32_v3 }
  0x10   :  { %v36_v4 = vld.sshfl [vmem:[#allocation1] sm:$0xff pattern:$0x75316420]  ;;  %v37_v5 = vld.sshfl [vmem:[#allocation1 + $0x8] sm:$0xff pattern:$0x75316420] }
  0x11   :  { %v40_v6 = vld.sshfl [vmem:[#allocation1 + $0x10] sm:$0xff pattern:$0x75316420]  ;;  %v41_v7 = vld.sshfl [vmem:[#allocation1 + $0x18] sm:$0xff pattern:$0x75316420] }
  0x12   :  { %v47_v8 = vsel %vm46_vm0, %v36_v4, 0.0  ;;  %v54_v9 = vsel %vm46_vm0, %v37_v5, 0.0  ;;  %v61_v10 = vsel %vm46_vm0, %v40_v6, 0.0  ;;  %v68_v11 = vsel %vm46_vm0, %v41_v7, 0.0 }
  0x13   :  { %v48_v12 = vrot.slane %v47_v8, 4  ;;  %v55_v13 = vrot.slane %v54_v9, 4  ;;  %v62_v14 = vrot.slane %v61_v10, 4  ;;  %v69_v15 = vrot.slane %v68_v11, 4 }
  0x15   :  { %v49_v16 = vadd.f32 %v48_v12, %v47_v8  ;;  %v56_v17 = vadd.f32 %v55_v13, %v54_v9  ;;  %v63_v18 = vadd.f32 %v62_v14, %v61_v10  ;;  %v70_v19 = vadd.f32 %v69_v15, %v68_v11 }
  0x17   :  { %v50_v20 = vrot.slane %v49_v16, 2  ;;  %v57_v21 = vrot.slane %v56_v17, 2  ;;  %v64_v22 = vrot.slane %v63_v18, 2  ;;  %v71_v23 = vrot.slane %v70_v19, 2 }
  0x19   :  { %v51_v24 = vadd.f32 %v50_v20, %v49_v16  ;;  %v58_v25 = vadd.f32 %v57_v21, %v56_v17  ;;  %v65_v26 = vadd.f32 %v64_v22, %v63_v18  ;;  %v72_v27 = vadd.f32 %v71_v23, %v70_v19 }
  0x1b   :  { %v52_v28 = vrot.slane %v51_v24, 1  ;;  %v59_v29 = vrot.slane %v58_v25, 1  ;;  %v66_v30 = vrot.slane %v65_v26, 1  ;;  %v73_v31 = vrot.slane %v72_v27, 1 }
  0x1d   :  { %v53_v32 = vadd.f32 %v52_v28, %v51_v24  ;;  %v60_v33 = vadd.f32 %v59_v29, %v58_v25  ;;  %v67_v34 = vadd.f32 %v66_v30, %v65_v26  ;;  %v74_v35 = vadd.f32 %v73_v31, %v72_v27 }
  0x1f   :  { %v76_v36 = vmax.f32 %v53_v32, 0.0  ;;  %v77_v37 = vmax.f32 %v60_v33, 0.0  ;;  %v78_v38 = vmax.f32 %v67_v34, 0.0  ;;  %v79_v39 = vmax.f32 %v74_v35, 0.0 }
  0x21   :  { %162 = vrsqrt.f32 %v76_v36  ;;  %vm86_vm3 = vweird.f32 %v76_v36  ;;  %vm96_vm6 = vweird.f32 %v77_v37  ;;  %vm106_vm9 = vweird.f32 %v78_v38 }
  0x22   :  { %164 = vrsqrt.f32 %v77_v37  ;;  %vm116_vm11 = vweird.f32 %v79_v39 }
  0x23   :  { %166 = vrsqrt.f32 %v78_v38 }
  0x24   :  { %168 = vrsqrt.f32 %v79_v39 }
  0x27   :  { %v163_v40 = vpop.eup %162 }
  0x28   :  { %v165_v41 = vpop.eup %164  ;;  %v81_v42 = vmul.f32 %v163_v40, %v76_v36  ;;  %vm87_vm1 = vweird.f32 %v163_v40 }
  0x29   :  { %v167_v43 = vpop.eup %166  ;;  %v91_v44 = vmul.f32 %v165_v41, %v77_v37  ;;  %vm97_vm2 = vweird.f32 %v165_v41  ;;  %vm262_vm5 = vmor %vm86_vm3, %vm87_vm1 }
  0x2a   :  { %v169_v45 = vpop.eup %168  ;;  %v82_v46 = vmul.f32 %v163_v40, %v81_v42  ;;  %v101_v47 = vmul.f32 %v167_v43, %v78_v38  ;;  %vm107_vm4 = vweird.f32 %v167_v43  ;;  %vm98_vm8 = vmor %vm96_vm6, %vm97_vm2 }
  0x2b   :  { %v92_v48 = vmul.f32 %v165_v41, %v91_v44  ;;  %v111_v49 = vmul.f32 %v169_v45, %v79_v39  ;;  %vm117_vm7 = vweird.f32 %v169_v45  ;;  %vm108_vm10 = vmor %vm106_vm9, %vm107_vm4 }
  0x2c   :  { %v83_v50 = vmul.f32 0.5, %v82_v46  ;;  %v102_v51 = vmul.f32 %v167_v43, %v101_v47  ;;  %vm118_vm12 = vmor %vm116_vm11, %vm117_vm7 }
  0x2d   :  { %v93_v52 = vmul.f32 0.5, %v92_v48  ;;  %v112_v53 = vmul.f32 %v169_v45, %v111_v49 }
  0x2e   :  { %v84_v54 = vsub.f32 1.5, %v83_v50  ;;  %v103_v55 = vmul.f32 0.5, %v102_v51 }
  0x2f   :  { %v94_v56 = vsub.f32 1.5, %v93_v52  ;;  %v113_v58 = vmul.f32 0.5, %v112_v53 }
  0x30   :  { %v85_v59 = vmul.f32 %v163_v40, %v84_v54  ;;  %v104_v60 = vsub.f32 1.5, %v103_v55 }
  0x31   :  { %v95_v62 = vmul.f32 %v165_v41, %v94_v56  ;;  %v114_v63 = vsub.f32 1.5, %v113_v58 }
  0x32   :  { %v105_v2 = vmul.f32 %v167_v43, %v104_v60  ;;  %v89_v3 = vsel %vm262_vm5, %v163_v40, %v85_v59 }
  0x33   :  { %v99_v4 = vsel %vm98_vm8, %v165_v41, %v95_v62  ;;  %v115_v5 = vmul.f32 %v169_v45, %v114_v63  ;;  %v121_v9 = vmul.f32 %v120_v57, %v89_v3 }
  0x34   :  { %v122_v6 = vmul.f32 %v120_v57, %v99_v4  ;;  %v109_v7 = vsel %vm108_vm10, %v167_v43, %v105_v2 }
  0x35   :  { %v119_v8 = vsel %vm118_vm12, %v169_v45, %v115_v5  ;;  %v123_v13 = vmul.f32 %v120_v57, %v109_v7 }
  0x36   :  { %v129_v10 = vrot.slane %v122_v6, 4  ;;  %v124_v11 = vmul.f32 %v120_v57, %v119_v8 }
  0x38   :  { %v131_v12 = vsel %vm46_vm0, %v121_v9, %v129_v10  ;;  %v130_v14 = vrot.slane %v124_v11, 4 }
  0x39   :  { %v135_v15 = vmul.f32 %v131_v12, %v247_v0 }
  0x3a   :  { %v132_v16 = vsel %vm46_vm0, %v123_v13, %v130_v14 }
  0x3b   :  { %137 = vst [vmem:[#allocation6] sm:$0xff] %v135_v15  ;;  %v136_v17 = vmul.f32 %v132_v16, %v249_v1 }
  0x3d   :  { %138 = vst [vmem:[#allocation6 + $0x8] sm:$0xff] %v136_v17 }
  0x3e   :  { %151 = dma.vmem_to_hbm [thread:$0]  %s144_s17, 256, %s146_s20, [#allocation5], %s223_s14, %s223_s14, %s224_s15  }
  0x3f   :  { %220 = dma.done.wait [#allocation5], 256  }
  0x40   :  { %221 = vsyncadd [#allocation5], 4294967040 }
  0x41   :  { %156 = vsyncpa [#allocation4], 1 }
  0x42   :  { %157 = vsyncpa [#allocation5], 1 }

</bundles_post_ra>
